<compile_context>
chip_gen: v7x
topology: tpu7x:2x2x1
jax: 0.10.0
libtpu: 0.0.40
codegen_flags: <defaults>
</compile_context>

<pallas_src>
import functools

import jax
import jax.numpy as jnp
from jax.experimental import pallas as pl
from jax.experimental.pallas import tpu as pltpu


# ----------------------------- Pallas kernel --------------------------------
def _deform_conv_relu_kernel(s_ref, w_ref, o_ref):
    """Fused deformable conv (single matmul) + ReLU for one (image, HW tile).

    s_ref: (1, Cin*KK, Tq)  bf16   weighted bilinear samples (im2col columns)
    w_ref: (Cout, Cin*KK)   bf16   conv weight, contraction dim = Cin*KK
    o_ref: (1, Cout, Tq)           output tile, lane-dense along spatial axis
    """
    acc = jnp.dot(w_ref[...], s_ref[0],
                  preferred_element_type=jnp.float32)        # (Cout, Tq) f32 acc
    o_ref[0] = jnp.maximum(acc, 0.0).astype(o_ref.dtype)     # fused ReLU


# ------------------------------- JAX glue ------------------------------------
def _get_sample_positions(anchors, H, W, stride, kernel_size):
    """Mirror of AlignConv.get_offset (per image).  anchors: (H*W, 5).
    Returns per-pixel, per-kernel-point sample coordinates (y, x) in
    feature-map units (= conv position + deform offset)."""
    pad = (kernel_size - 1) // 2
    kidx = jnp.arange(-pad, pad + 1, dtype=anchors.dtype)
    yy, xx = jnp.meshgrid(kidx, kidx, indexing="ij")       # torch.meshgrid 'ij'
    xx = xx.reshape(-1)                                     # (KK,)
    yy = yy.reshape(-1)
    xc = jnp.arange(W, dtype=anchors.dtype)
    yc = jnp.arange(H, dtype=anchors.dtype)
    yc, xc = jnp.meshgrid(yc, xc, indexing="ij")
    xc = xc.reshape(-1)                                     # (HW,)
    yc = yc.reshape(-1)
    x_conv = xc[:, None] + xx                               # (HW, KK)
    y_conv = yc[:, None] + yy

    x_ctr, y_ctr, w, h, a = jnp.split(anchors, 5, axis=1)   # each (HW, 1)
    x_ctr, y_ctr, w, h = x_ctr / stride, y_ctr / stride, w / stride, h / stride
    cos, sin = jnp.cos(a), jnp.sin(a)
    dw, dh = w / kernel_size, h / kernel_size
    x = dw * xx                                             # (HW, KK)
    y = dh * yy
    xr = cos * x - sin * y
    yr = sin * x + cos * y
    x_anchor = xr + x_ctr
    y_anchor = yr + y_ctr
    offset_x = x_anchor - x_conv
    offset_y = y_anchor - y_conv
    # DeformConv2d samples at (conv position + offset):
    return y_conv + offset_y, x_conv + offset_x             # (HW, KK) each


def _bilinear_tables(py, px, H, W):
    """For each sample point: 4 bilinear corners -> flattened input index +
    weight (0 for out-of-bounds corners, matching mmcv zero padding)."""
    y0 = jnp.floor(py)
    x0 = jnp.floor(px)
    y1 = y0 + 1.0
    x1 = x0 + 1.0
    ly = py - y0
    lx = px - x0
    hy = 1.0 - ly
    hx = 1.0 - lx
    corners = [(y0, x0, hy * hx), (y0, x1, hy * lx),
               (y1, x0, ly * hx), (y1, x1, ly * lx)]
    idxs, wgts = [], []
    for yc, xc, wc in corners:
        valid = (yc >= 0) & (yc <= H - 1) & (xc >= 0) & (xc <= W - 1)
        yi = jnp.clip(yc, 0, H - 1).astype(jnp.int32)
        xi = jnp.clip(xc, 0, W - 1).astype(jnp.int32)
        idxs.append(yi * W + xi)
        wgts.append(jnp.where(valid, wc, 0.0))
    idx = jnp.concatenate(idxs, axis=-1).astype(jnp.int32)   # (HW, 4*KK)
    wgt = jnp.concatenate(wgts, axis=-1).astype(jnp.float32)
    return idx, wgt


def _sampled_columns(x_flat, idx, wgt, KK):
    """Weighted bilinear gather -> deformable im2col columns, one image.

    x_flat: (Cin, HW)   idx/wgt: (HW, 4*KK)   ->   (Cin*KK, HW)
    Row order is ci*KK + k, matching weight.reshape(Cout, Cin*KK)."""
    C, HW = x_flat.shape
    g = jnp.take(x_flat, idx.reshape(-1), axis=1).reshape(C, HW, 4 * KK)
    g = g * wgt[None, :, :]                                  # f32 bilinear weights
    g = g.reshape(C, HW, 4, KK).sum(axis=2)                  # sum 4 corners
    return g.transpose(0, 2, 1).reshape(C * KK, HW)          # (Cin*KK, HW)


@functools.partial(jax.jit, static_argnames=("stride", "kernel_size"))
def align_conv_forward(x, anchors, weight, *, stride, kernel_size):
    """One AlignConv level.  x: (N, Cin, H, W); anchors: (N*H*W, 5);
    weight: (Cout, Cin, K, K).  Returns (N, Cout, H, W)."""
    N, C, H, W = x.shape
    HW = H * W
    Cout = weight.shape[0]
    KK = kernel_size * kernel_size
    anchors = anchors.reshape(N, HW, 5)

    # Offset / bilinear-corner tables (AlignConv.get_offset glue), vmapped over N.
    def tables(anch):
        py, px = _get_sample_positions(anch, H, W, float(stride), kernel_size)
        return _bilinear_tables(py, px, H, W)

    idx, wgt = jax.vmap(tables)(anchors)                      # (N, HW, 4*KK)

    # Deformable im2col: XLA gather + weighted corner sum (bf16 matmul operand).
    x_flat = x.reshape(N, C, HW)
    sampled = jax.vmap(_sampled_columns, in_axes=(0, 0, 0, None))(
        x_flat, idx, wgt, KK).astype(jnp.bfloat16)            # (N, Cin*KK, HW)
    w_mat = weight.reshape(Cout, C * KK).astype(jnp.bfloat16)  # (Cout, Cin*KK)

    # Lane-dense spatial tiles; >= 2 grid points per image at level 0.
    Tq = 128 if HW % 128 == 0 else HW
    grid = (N, HW // Tq)

    out = pl.pallas_call(
        _deform_conv_relu_kernel,
        out_shape=jax.ShapeDtypeStruct((N, Cout, HW), x.dtype),
        grid=grid,
        in_specs=[
            pl.BlockSpec((1, C * KK, Tq), lambda n, q: (n, 0, q)),
            pl.BlockSpec((Cout, C * KK), lambda n, q: (0, 0)),
        ],
        out_specs=pl.BlockSpec((1, Cout, Tq), lambda n, q: (n, 0, q)),
        compiler_params=pltpu.CompilerParams(
            dimension_semantics=("parallel", "parallel")),
    )(sampled, w_mat)

    return out.reshape(N, Cout, H, W)                         # already NCHW


def _reference_forward(x, anchors, weight, stride, kernel_size):
    """Pure f32 JAX reference of AlignConv forward (deform conv + ReLU)."""
    N, C, H, W = x.shape
    HW = H * W
    Cout = weight.shape[0]
    KK = kernel_size * kernel_size
    anchors = anchors.reshape(N, HW, 5)

    def per_image(xf, anch):
        py, px = _get_sample_positions(anch, H, W, float(stride), kernel_size)
        idx, wgt = _bilinear_tables(py, px, H, W)
        cols = _sampled_columns(xf, idx, wgt, KK)             # (Cin*KK, HW) f32
        out = jnp.maximum(weight.reshape(Cout, C * KK) @ cols, 0.0)
        return out.reshape(Cout, H, W)

    return jax.vmap(per_image)(x.reshape(N, C, HW), anchors)


class AlignConvModuleJAX:
    """JAX/Pallas port of AlignConvModule."""

    def __init__(self, in_channels, out_channels, featmap_strides,
                 align_conv_size, key):
        self.in_channels = in_channels
        self.out_channels = out_channels
        self.featmap_strides = featmap_strides
        self.align_conv_size = align_conv_size
        keys = jax.random.split(key, len(in_channels))
        # DeformConv2d weights: normal_init(std=0.01); mmcv DeformConv2d has no bias.
        self.weights = [
            0.01 * jax.random.normal(
                k, (out_channels, cin, align_conv_size, align_conv_size), jnp.float32)
            for k, cin in zip(keys, in_channels)
        ]

    def __call__(self, x, rbboxes):
        # rbboxes: list over images of list over levels of (H*W, 5) tensors
        mlvl_rbboxes = [jnp.concatenate(r, axis=0) for r in zip(*rbboxes)]
        out = []
        for x_s, rb_s, w_s, stride in zip(x, mlvl_rbboxes, self.weights,
                                          self.featmap_strides):
            out.append(align_conv_forward(x_s, rb_s, w_s,
                                          stride=float(stride),
                                          kernel_size=self.align_conv_size))
        return out


if __name__ == "__main__":
    key = jax.random.PRNGKey(0)
    N = 2
    in_channels = [4, 8]
    out_channels = 8
    featmap_strides = [8, 16]
    spatial = [16, 8]
    align_conv_size = 3

    k_mod, k_feat, k_anch = jax.random.split(key, 3)
    module = AlignConvModuleJAX(in_channels, out_channels, featmap_strides,
                                align_conv_size, k_mod)

    feat_keys = jax.random.split(k_feat, len(in_channels))
    x = [jax.random.normal(fk, (N, cin, s, s), jnp.float32)
         for fk, cin, s in zip(feat_keys, in_channels, spatial)]

    # rbboxes[image][level]: (H*W, 5) = (x_ctr, y_ctr, w, h, angle), image coords
    rbboxes = []
    for i in range(N):
        per_img = []
        for l, (s, stride) in enumerate(zip(spatial, featmap_strides)):
            kb = jax.random.fold_in(k_anch, i * 17 + l)
            k1, k2 = jax.random.split(kb)
            yy, xx = jnp.meshgrid(jnp.arange(s, dtype=jnp.float32),
                                  jnp.arange(s, dtype=jnp.float32), indexing="ij")
            xc = (xx.reshape(-1) + 0.5) * stride
            yc = (yy.reshape(-1) + 0.5) * stride
            wh = stride * (2.0 + 4.0 * jax.random.uniform(k1, (s * s, 2), jnp.float32))
            ang = (jax.random.uniform(k2, (s * s,), jnp.float32) - 0.5) * jnp.pi
            per_img.append(jnp.stack([xc, yc, wh[:, 0], wh[:, 1], ang], axis=1))
        rbboxes.append(per_img)

    outs = module(x, rbboxes)
    for o in outs:
        jax.block_until_ready(o)

    # Shape check (NCHW) + numerical check against a pure-f32 JAX reference.
    expected = [(N, out_channels, s, s) for s in spatial]
    assert [tuple(o.shape) for o in outs] == expected, (outs[0].shape, expected)

    mlvl_rbboxes = [jnp.concatenate(r, axis=0) for r in zip(*rbboxes)]
    for o, x_s, rb_s, w_s, stride in zip(outs, x, mlvl_rbboxes, module.weights,
                                         featmap_strides):
        ref = _reference_forward(x_s, rb_s, w_s, float(stride), align_conv_size)
        assert jnp.allclose(o, ref, rtol=5e-2, atol=1e-2), \
            float(jnp.max(jnp.abs(o - ref)))

    print("KERNEL_OK")
</pallas_src>

<mosaic_0001>
module attributes {stable_mosaic.version = 11 : i64} {
  func.func @_deform_conv_relu_kernel(%arg0: i32, %arg1: i32, %arg2: memref<1x36x128xbf16, #tpu.memory_space<vmem>>, %arg3: memref<8x36xbf16, #tpu.memory_space<vmem>>, %arg4: memref<1x8x128xf32, #tpu.memory_space<vmem>>) attributes {dimension_semantics = [#tpu.dimension_semantics<parallel>, #tpu.dimension_semantics<parallel>], iteration_bounds = array<i64: 2, 2>, scalar_prefetch = 0 : i64, scratch_operands = 0 : i64, tpu.core_type = #tpu.core_type<tc>, window_params = [{transform_indices = @transform_0, window_bounds = array<i64: 1, 36, 128>}, {pipeline_mode = #tpu.pipeline_mode<synchronous>, transform_indices = @transform_1, window_bounds = array<i64: 8, 36>}, {transform_indices = @transform_2, window_bounds = array<i64: 1, 8, 128>}]} {
    %c0 = arith.constant 0 : index
    %c0_0 = arith.constant 0 : index
    %0 = vector.load %arg3[%c0, %c0_0] : memref<8x36xbf16, #tpu.memory_space<vmem>>, vector<8x36xbf16>
    %c0_1 = arith.constant 0 : index
    %c0_2 = arith.constant 0 : index
    %c0_3 = arith.constant 0 : index
    %1 = vector.load %arg2[%c0_1, %c0_2, %c0_3] : memref<1x36x128xbf16, #tpu.memory_space<vmem>>, vector<1x36x128xbf16>
    %2 = vector.shape_cast %1 : vector<1x36x128xbf16> to vector<36x128xbf16>
    %cst = arith.constant dense<0.000000e+00> : vector<8x128xf32>
    %3 = tpu.matmul %0, %2, %cst {dimension_numbers = #tpu.dot_dimension_numbers<[1], [0], [0], [1], [0, 0, 1, 1], [], []>} : vector<8x36xbf16>, vector<36x128xbf16>, vector<8x128xf32> -> vector<8x128xf32>
    %cst_4 = arith.constant 0.000000e+00 : f32
    %4 = vector.broadcast %cst_4 : f32 to vector<8x128xf32>
    %5 = arith.maximumf %3, %4 : vector<8x128xf32>
    %c0_5 = arith.constant 0 : index
    %c0_6 = arith.constant 0 : index
    %c0_7 = arith.constant 0 : index
    %6 = vector.load %arg4[%c0_5, %c0_6, %c0_7] : memref<1x8x128xf32, #tpu.memory_space<vmem>>, vector<1x8x128xf32>
    %7 = vector.shape_cast %6 : vector<1x8x128xf32> to vector<8x128xf32>
    %8 = vector.shape_cast %5 : vector<8x128xf32> to vector<1x8x128xf32>
    tpu.vector_store %arg4[%c0_5, %c0_6, %c0_7], %8 {strides = array<i32>} : memref<1x8x128xf32, #tpu.memory_space<vmem>>, vector<1x8x128xf32>,
    return
  }
  func.func @transform_0(%arg0: i32, %arg1: i32) -> (i32, i32, i32) {
    %c0_i32 = arith.constant 0 : i32
    %c0_i32_0 = arith.constant 0 : i32
    return %arg0, %c0_i32, %arg1 : i32, i32, i32
  }
  func.func @transform_1(%arg0: i32, %arg1: i32) -> (i32, i32) {
    %c0_i32 = arith.constant 0 : i32
    %c0_i32_0 = arith.constant 0 : i32
    %c0_i32_1 = arith.constant 0 : i32
    return %c0_i32, %c0_i32_0 : i32, i32
  }
  func.func @transform_2(%arg0: i32, %arg1: i32) -> (i32, i32, i32) {
    %c0_i32 = arith.constant 0 : i32
    %c0_i32_0 = arith.constant 0 : i32
    return %arg0, %c0_i32, %arg1 : i32, i32, i32
  }
}

</mosaic_0001>

<bundles_post_ra>
// kernel: mul.46
= control target key start
LH: loop header
LB: loop body
LE: loop exit
PB: predicated region body
PF: predicated region fallthrough
CT: control target
= control target key end

     0   :  { %vm7_vm0 = vcmask 23552   ;;  %s30_s8 = smov 3   ;;  %vm13_vm1 = vcmask 72752   ;;  %vm19_vm2 = vcmask 48152   ;;  %s47_s0 = inlined_call_operand.vmem [shape: f32[3,3], index: 0, kind: input, shape index: {}]   ;;  %s48_s1 = inlined_call_operand.vmem [shape: f32[9], index: 1, kind: output, shape index: {}]  }
   0x1   :  { %v4_v0 = vld [vmem:[%s47_s0] sm:$0xf]  ;;  %s29_s0 = smov 6  }
   0x2   :  { %5 = vst [vmem:[#allocation1] sm:$0xf] %v4_v0 }
   0x9   :  { %v10_v1 = vld [vmem:[#allocation1 + $0x2] sm:$0x1]   ;;  %v6_v2 = vld [vmem:[#allocation1] sm:$0x1]   ;;  %v16_v3 = vld [vmem:[#allocation1 + $0x1] sm:$0x1]  }
   0xa   :  { %11 = vrot.lane.b32.xlu0 %v10_v1, %s29_s0  ;;  %8 = vst.msk [vmem:[#allocation0] sm:$0x1] %vm7_vm0, %v6_v2  }
   0xe   :  { %17 = vrot.lane.b32.xlu0 %v16_v3, %s30_s8 }
  0x7c   :  { %v12_v4 = vpop.permute.xlu0 %11  }
  0x7d   :  { %14 = vst.msk [vmem:[#allocation0] sm:$0x1] %vm13_vm1, %v12_v4  }
  0x80   :  { %v18_v5 = vpop.permute.xlu0 %17  }
  0x81   :  { %20 = vst.msk [vmem:[#allocation0] sm:$0x1] %vm19_vm2, %v18_v5  }
  0x88   :  { %v24_v6 = vld [vmem:[#allocation0] sm:$0x1] }
  0x89   :  { %26 = vst [vmem:[%s48_s1] sm:$0x1] %v24_v6 }

// kernel: align_conv_forward.1
= control target key start
LH: loop header
LB: loop body
LE: loop exit
PB: predicated region body
PF: predicated region fallthrough
CT: control target
= control target key end

     0   :  { %s550_s9 = smov 0   ;;  %s552_s10 = smov 0   ;;  %s644_s0 = inlined_call_operand.vmem [shape: bf16[2,36,256], index: 0, kind: input, shape index: {}]   ;;  %s645_s1 = inlined_call_operand.vmem [shape: bf16[8,36], index: 1, kind: input, shape index: {}]   ;;  %s646_s2 = inlined_call_operand.vmem [shape: f32[2,8,256], index: 2, kind: output, shape index: {}]  }
   0x1   :  { %s554_s11 = smov 0   ;;  %s556_s12 = smov 0  }
   0x2   :  { %s558_s13 = smov 0   ;;  %s560_s14 = smov 0  }
   0x3   :  { %s562_s15 = smov 0  }
   0x4 LB: > { %s21_s16 = sadd.s32 1, %s523_s13  ;;  %s24_s17 = sadd.s32 1, %s527_s14  ;;  %s531_s15 = sphi %s562_s15, %s12_s15   ;;  %s527_s14 = sphi %s560_s14, %s652_s14   ;;  %s523_s13 = sphi %s558_s13, %s651_s13   ;;  %s519_s12 = sphi %s556_s12, %s650_s12   ;;  %s515_s11 = sphi %s554_s11, %s649_s11   ;;  %s511_s10 = sphi %s552_s10, %s648_s10   ;;  %s507_s9 = sphi %s550_s9, %s647_s9  }
   0x5   : > { %p22_p0 = scmp.ge.s32.totalorder %s21_s16, 2  ;;  %p40_p1 = scmp.ne.s32.totalorder %s511_s10, %s507_s9 }
   0x6   : > { %p41_p2 = scmp.eq.s32.totalorder %s531_s15, 0  ;;  %s33_s21 = sadd.s32 1, %s511_s10 }
   0x7   : > { %s654_s16 = smov (%p22_p0, %s21_s16), 0  ;;  %s656_s17 = smov (!%p22_p0, %s24_s17), %s527_s14 }
   0x8   : > { %p42_p3 = por %p41_p2, %p40_p1  ;;  %p26_p4 = scmp.ge.s32.totalorder %s656_s17, 2 }
   0x9   : > { %s29_s18 = ssub.s32 %s523_s13, %s654_s16  ;;  %p388_p6 = scmp.ge.s32.totalorder %s531_s15, 4 }
   0xa   : > { %s658_s17 = smov (%p26_p4, %s656_s17), 0 }
   0xb   : > { %s28_s19 = ssub.s32 %s527_s14, %s658_s17  ;;  %118 = sbr.rel (%p388_p6) target bundleno = 28 (0x1c), region = 20 }
   0xc   : > { %s30_s20 = sor.u32 %s29_s18, %s28_s19 }
   0xd   : > { %p31_p5 = scmp.eq.s32.totalorder %s30_s20, 0 }
   0xf   : > { %s601_s22 = scalar_select %p31_p5, %s511_s10, %s33_s21  }
  0x12   : > { %121 = sbr.rel (!%p42_p3) target bundleno = 28 (0x1c), region = 24  ;;  %s123_s23 = sand.u32 (%p42_p3), 1, %s511_s10  }
  0x13   : > { %s414_s24 = smul.u32 (%p42_p3), 10, %s527_s14 }
  0x14   : > { %s413_s25 = smul.u32 (%p42_p3), 20, %s123_s23 }
  0x15   : > { %s127_s26 = sadd.s32 (%p42_p3), %s523_s13, %s414_s24 }
  0x16   : > { %s389_s27 = sshll.u32 (%p42_p3), %s127_s26, 2  ;;  %s125_s3 = scalar_lea.vmem (%p42_p3), [#allocation2], %s413_s25 }
  0x17   : > { %s129_s30 = scalar_lea.vmem (%p42_p3), %s644_s0, %s389_s27 }
  0x18   : > { %v145_v0 = vld [vmem:[%s129_s30] sm:$0xf] (%p42_p3)  ;;  %v147_v1 = vld [vmem:[%s129_s30 + $0x8] sm:$0xf] (%p42_p3)  ;;  %v149_v2 = vld [vmem:[%s129_s30 + $0x10] sm:$0xf] (%p42_p3) }
  0x19   : > { %146 = vst [vmem:[%s125_s3] sm:$0xf] %v145_v0  ;;  %148 = vst [vmem:[%s125_s3 + $0x4] sm:$0xf] %v147_v1  ;;  %v151_v3 = vld [vmem:[%s129_s30 + $0x18] sm:$0xf] }
  0x1a   : > { %150 = vst [vmem:[%s125_s3 + $0x8] sm:$0xf] %v149_v2  ;;  %v153_v4 = vld [vmem:[%s129_s30 + $0x20] sm:$0xf]  ;;  %152 = vst [vmem:[%s125_s3 + $0xc] sm:$0xf] %v151_v3 }
  0x1b   : > { %154 = vst [vmem:[%s125_s3 + $0x10] sm:$0xf] %v153_v4 }
  0x1c PF: > { %p390_p7 = scmp.ge.s32.totalorder %s531_s15, 1  ;;  %p186_p8 = scmp.lt.s32.totalorder %s531_s15, 5 }
  0x1e   : > { %p187_p9 = pnand %p390_p7, %p186_p8 }
  0x1f   : > { %s193_s4 = sand.u32 (!%p187_p9), 1, %s507_s9   ;;  %v533_v5 = vmov (!%p187_p9), 0.0   ;;  %vm534_vm0 = vmmov (!%p187_p9), 0   ;;  %vm251_vm1 = vcmask (!%p187_p9), 1041408   ;;  %v226_v10 = vld [vmem:[%s645_s1] sm:$0xf] (!%p187_p9) }
  0x20   : > { %190 = sbr.rel (%p187_p9) target bundleno = 263 (0x107), region = 65  ;;  %403 = vmatprep.subr.bf16.mxu0 (!%p187_p9), %v533_v5  ;;  %409 = vmatprep.mubr.msk.bf16.mxu0 (!%p187_p9), %vm534_vm0, %v533_v5  ;;  %vm247_vm2 = vcmask (!%p187_p9), 293888   ;;  %p217_p10 = scmp.lt.s32.totalorder (!%p187_p9), %s519_s12, 1 }
  0x21   : > { %s415_s5 = smul.u32 (!%p187_p9), 20, %s193_s4  ;;  %p219_p11 = scmp.lt.s32.totalorder (!%p187_p9), %s515_s11, 1 }
  0x23   : > { %s195_s6 = scalar_lea.vmem (!%p187_p9), [#allocation2], %s415_s5 }
  0x24   : > { %v474_v6 = vld [vmem:[%s195_s6] sm:$0xff] (!%p187_p9)   ;;  %v475_v7 = vld [vmem:[%s195_s6 + $0x8] sm:$0xff] (!%p187_p9)   ;;  %v476_v8 = vld [vmem:[%s195_s6 + $0x10] ss:$0 sps:$4 sm:$0x33] (!%p187_p9)  }
  0x25   : > { %404 = vmatpush3.bf16.msra.mxu0 (!%p187_p9), %v474_v6  ;;  %v253_v9 = vsel (!%p187_p9), %vm251_vm1, %v476_v8, 0 }
  0x26   : > { %405 = vmatprep.subr.bf16.mxu0 (!%p187_p9), %v533_v5 }
  0x27   : > { %s660_s12 = smov (!%p217_p10, %s519_s12), 1  ;;  %s662_s11 = smov (!%p219_p11, %s515_s11), 1 }
  0x28   : > { %s391_s9 = sshll.u32 %s660_s12, 1 }
  0x29   : > { %406 = vmatpush3.bf16.msra.mxu0 %v475_v7  ;;  %s222_s18 = sadd.s32 %s391_s9, %s662_s11 }
  0x2a   : > { %407 = vmatprep.subr.bf16.mxu0 %v533_v5  ;;  %s392_s19 = sshll.u32 %s222_s18, 3 }
  0x2b   : > { %s224_s23 = scalar_lea.vmem %s646_s2, %s392_s19 }
  0x2d   : > { %408 = vmatpush3.bf16.msra.mxu0 %v253_v9 }
  0x30   : > { %410 = vmatmul.mubr.msk.bf16.vlgmr.msra.gmra.mrb[0].mxu0 %vm247_vm2, %v226_v10 }
 0x103   : > { %v289_v11 = vpop.f32.mrb[0].mxu0 }
 0x104   : > { %v295_v12 = vmax.f32 %v289_v11, 0.0  ;;  %v411_v13 = vpop.f32.mrb[1].mxu0 }
 0x105   : > { %v292_v14 = vpop.f32.mrb[2].mxu0 }
 0x106   : > { %296 = vst [vmem:[%s224_s23] sm:$0xff] %v295_v12  ;;  %v412_v15 = vpop.f32.mrb[3].mxu0 }
 0x107 PF: > { %s12_s15 = sadd.s32 1, %s531_s15   ;;  %s647_s9 = smov %s511_s10 }
 0x108   : > { %p9_p12 = scmp.ge.s32.totalorder %s12_s15, 6   ;;  %s648_s10 = smov %s601_s22 }
 0x109   : > { %s649_s11 = smov %s523_s13  ;;  %s650_s12 = smov %s527_s14 }
 0x10a   : > { %s651_s13 = smov %s654_s16  ;;  %s652_s14 = smov %s658_s17 }
 0x10b   :  { %11 = sbr.rel (!%p9_p12) target bundleno = 4 (0x4), region = 104 }

</bundles_post_ra>
